<compile_context>
chip_gen: v7x
topology: tpu7x:2x2x1
jax: 0.10.0
libtpu: 0.0.40
codegen_flags: <defaults>
</compile_context>

<pallas_src>
import functools

import jax
import jax.numpy as jnp
from jax.experimental import pallas as pl
from jax.experimental.pallas import tpu as pltpu


def dueling_dqn_kernel(
    x_ref,
    w1_ref, b1_ref,
    w2_ref, b2_ref,
    wb_ref, bb_ref,       # fused value||advantage branch layer
    wh_ref, bh_ref,       # fused block-diagonal heads -> [B, 1 + A]
    q_ref,
    *, action_size,
):
    f32 = jnp.float32
    x = x_ref[...]

    # fc1 + relu  (weights arrive as bf16, promoted to f32 for accuracy; f32 acc)
    h = jnp.dot(x, w1_ref[...].astype(f32), preferred_element_type=f32) + b1_ref[...]
    h = jnp.maximum(h, 0.0)

    # fc2 + relu
    h = jnp.dot(h, w2_ref[...].astype(f32), preferred_element_type=f32) + b2_ref[...]
    h = jnp.maximum(h, 0.0)

    # fused branch layer: cols [0:128] = value branch, cols [128:256] = advantage branch
    hb = jnp.dot(h, wb_ref[...].astype(f32), preferred_element_type=f32) + bb_ref[...]
    hb = jnp.maximum(hb, 0.0)

    # fused block-diagonal heads: out[:, :1] = V, out[:, 1:] = A
    out = jnp.dot(hb, wh_ref[...].astype(f32), preferred_element_type=f32) + bh_ref[...]
    v = out[:, :1]
    a = out[:, 1:]

    # dueling combine: q = V + (A - mean_A(A)); static 1/A multiply over true A cols
    a_mean = jnp.sum(a, axis=1, keepdims=True) * (1.0 / action_size)
    q_ref[...] = v + (a - a_mean)


def prepare_params(params, weight_dtype=jnp.bfloat16):
    """One-time packing: fuse branch/head weights, cast weights to bf16,
    pre-reshape biases to [1, out] f32. Do NOT call this per forward step."""
    w1, b1 = params["fc1"]
    w2, b2 = params["fc2"]
    wv1, bv1 = params["fc_value"]
    wv2, bv2 = params["value"]
    wa1, ba1 = params["fc_advantage"]
    wa2, ba2 = params["advantage"]

    hidden = wv2.shape[0]          # 128
    action_size = wa2.shape[1]

    # Fused branch first-layer: [256, 256]
    w_branch = jnp.concatenate([wv1, wa1], axis=1)
    b_branch = jnp.concatenate([bv1, ba1], axis=0)

    # Fused block-diagonal heads: [256, 1 + A]
    w_head = jnp.zeros((2 * hidden, 1 + action_size), jnp.float32)
    w_head = w_head.at[:hidden, :1].set(wv2)
    w_head = w_head.at[hidden:, 1:].set(wa2)
    b_head = jnp.concatenate([bv2, ba2], axis=0)

    cast_w = lambda w: w.astype(weight_dtype)
    cast_b = lambda b: b.reshape(1, -1).astype(jnp.float32)
    return {
        "w1": cast_w(w1), "b1": cast_b(b1),
        "w2": cast_w(w2), "b2": cast_b(b2),
        "w_branch": cast_w(w_branch), "b_branch": cast_b(b_branch),
        "w_head": cast_w(w_head), "b_head": cast_b(b_head),
        "action_size": action_size,
    }


def dueling_dqn_forward(state, prepared, *, max_batch_tile=256):
    """state: [B, state_size] f32; prepared: output of prepare_params."""
    B, S = state.shape
    A = prepared["action_size"]

    # Tile the batch only when it is big enough to matter; weights stay
    # VMEM-resident across grid steps (index_map pinned to (0, 0)).
    TB = B if B <= max_batch_tile else max_batch_tile
    B_pad = ((B + TB - 1) // TB) * TB
    x = state if B_pad == B else jnp.pad(state, ((0, B_pad - B), (0, 0)))
    grid = (B_pad // TB,)

    weight_args = [
        prepared["w1"], prepared["b1"],
        prepared["w2"], prepared["b2"],
        prepared["w_branch"], prepared["b_branch"],
        prepared["w_head"], prepared["b_head"],
    ]

    def pinned(shape):
        return pl.BlockSpec(shape, lambda i: (0, 0))

    in_specs = [pl.BlockSpec((TB, S), lambda i: (i, 0))]
    in_specs += [pinned(w.shape) for w in weight_args]
    out_specs = pl.BlockSpec((TB, A), lambda i: (i, 0))

    kernel = functools.partial(dueling_dqn_kernel, action_size=A)

    q = pl.pallas_call(
        kernel,
        out_shape=jax.ShapeDtypeStruct((B_pad, A), jnp.float32),
        grid=grid,
        in_specs=in_specs,
        out_specs=out_specs,
        compiler_params=pltpu.CompilerParams(
            dimension_semantics=("parallel",),
        ),
    )(x, *weight_args)

    return q if B_pad == B else q[:B]


def init_params(key, state_size, action_size):
    """Deterministic synthetic init (uniform, PyTorch-Linear-like fan_in scaling)."""
    layer_shapes = {
        "fc1": (state_size, 256),
        "fc2": (256, 256),
        "fc_value": (256, 128),
        "value": (128, 1),
        "fc_advantage": (256, 128),
        "advantage": (128, action_size),
    }
    params = {}
    for name, (fan_in, fan_out) in layer_shapes.items():
        key, kw, kb = jax.random.split(key, 3)
        bound = 1.0 / jnp.sqrt(fan_in)
        w = jax.random.uniform(kw, (fan_in, fan_out), jnp.float32, -bound, bound)
        b = jax.random.uniform(kb, (fan_out,), jnp.float32, -bound, bound)
        params[name] = (w, b)
    return params


def reference_forward(state, params, weight_dtype=None):
    """Pure-JAX reference of the original PyTorch forward.
    If weight_dtype is given, weights are rounded to that dtype (to match the
    kernel's bf16-weight / f32-accumulate arithmetic)."""
    hi = jax.lax.Precision.HIGHEST

    def lin(x, p):
        w, b = p
        if weight_dtype is not None:
            w = w.astype(weight_dtype).astype(jnp.float32)
        return jnp.dot(x, w, precision=hi) + b

    h = jax.nn.relu(lin(state, params["fc1"]))
    h = jax.nn.relu(lin(h, params["fc2"]))
    v = lin(jax.nn.relu(lin(h, params["fc_value"])), params["value"])
    a = lin(jax.nn.relu(lin(h, params["fc_advantage"])), params["advantage"])
    return v + (a - a.mean(axis=1, keepdims=True))


if __name__ == "__main__":
    key = jax.random.PRNGKey(0)
    state_size = 16
    action_size = 4
    batch = 8

    key, k_state = jax.random.split(key)
    state = jax.random.normal(k_state, (batch, state_size), jnp.float32)
    params = init_params(key, state_size, action_size)

    prepared = prepare_params(params)  # one-time fuse / bf16 cast / bias reshape
    q = dueling_dqn_forward(state, prepared)
    q = jax.block_until_ready(q)

    assert q.shape == (batch, action_size)

    # Tight check against a reference using identically bf16-rounded weights.
    q_ref_bf16w = reference_forward(state, params, weight_dtype=jnp.bfloat16)
    assert jnp.allclose(q, q_ref_bf16w, atol=2e-3, rtol=2e-3)

    # Loose check against the exact f32 PyTorch-equivalent forward
    # (difference is only bf16 weight rounding).
    q_ref_f32 = reference_forward(state, params)
    assert jnp.allclose(q, q_ref_f32, atol=5e-2, rtol=5e-2)

    print("KERNEL_OK")
</pallas_src>

<mosaic_0001>
module attributes {stable_mosaic.version = 11 : i64} {
  func.func @dueling_dqn_kernel(%arg0: i32, %arg1: memref<8x16xf32, #tpu.memory_space<vmem>>, %arg2: memref<16x256xbf16, #tpu.memory_space<vmem>>, %arg3: memref<1x256xf32, #tpu.memory_space<vmem>>, %arg4: memref<256x256xbf16, #tpu.memory_space<vmem>>, %arg5: memref<1x256xf32, #tpu.memory_space<vmem>>, %arg6: memref<256x256xbf16, #tpu.memory_space<vmem>>, %arg7: memref<1x256xf32, #tpu.memory_space<vmem>>, %arg8: memref<256x5xbf16, #tpu.memory_space<vmem>>, %arg9: memref<1x5xf32, #tpu.memory_space<vmem>>, %arg10: memref<8x4xf32, #tpu.memory_space<vmem>>) attributes {dimension_semantics = [#tpu.dimension_semantics<parallel>], iteration_bounds = array<i64: 1>, scalar_prefetch = 0 : i64, scratch_operands = 0 : i64, tpu.core_type = #tpu.core_type<tc>, window_params = [{transform_indices = @transform_0, window_bounds = array<i64: 8, 16>}, {pipeline_mode = #tpu.pipeline_mode<synchronous>, transform_indices = @transform_1, window_bounds = array<i64: 16, 256>}, {pipeline_mode = #tpu.pipeline_mode<synchronous>, transform_indices = @transform_2, window_bounds = array<i64: 1, 256>}, {pipeline_mode = #tpu.pipeline_mode<synchronous>, transform_indices = @transform_3, window_bounds = array<i64: 256, 256>}, {pipeline_mode = #tpu.pipeline_mode<synchronous>, transform_indices = @transform_4, window_bounds = array<i64: 1, 256>}, {pipeline_mode = #tpu.pipeline_mode<synchronous>, transform_indices = @transform_5, window_bounds = array<i64: 256, 256>}, {pipeline_mode = #tpu.pipeline_mode<synchronous>, transform_indices = @transform_6, window_bounds = array<i64: 1, 256>}, {pipeline_mode = #tpu.pipeline_mode<synchronous>, transform_indices = @transform_7, window_bounds = array<i64: 256, 5>}, {pipeline_mode = #tpu.pipeline_mode<synchronous>, transform_indices = @transform_8, window_bounds = array<i64: 1, 5>}, {transform_indices = @transform_9, window_bounds = array<i64: 8, 4>}]} {
    %c0 = arith.constant 0 : index
    %c0_0 = arith.constant 0 : index
    %0 = vector.load %arg1[%c0, %c0_0] : memref<8x16xf32, #tpu.memory_space<vmem>>, vector<8x16xf32>
    %c0_1 = arith.constant 0 : index
    %c0_2 = arith.constant 0 : index
    %1 = vector.load %arg2[%c0_1, %c0_2] : memref<16x256xbf16, #tpu.memory_space<vmem>>, vector<16x256xbf16>
    %2 = arith.extf %1 : vector<16x256xbf16> to vector<16x256xf32>
    %cst = arith.constant dense<0.000000e+00> : vector<8x256xf32>
    %3 = tpu.matmul %0, %2, %cst {dimension_numbers = #tpu.dot_dimension_numbers<[1], [0], [0], [1], [0, 0, 1, 1], [], []>} : vector<8x16xf32>, vector<16x256xf32>, vector<8x256xf32> -> vector<8x256xf32>
    %c0_3 = arith.constant 0 : index
    %c0_4 = arith.constant 0 : index
    %4 = vector.load %arg3[%c0_3, %c0_4] : memref<1x256xf32, #tpu.memory_space<vmem>>, vector<1x256xf32>
    %5 = vector.broadcast %4 : vector<1x256xf32> to vector<8x256xf32>
    %6 = arith.addf %3, %5 : vector<8x256xf32>
    %cst_5 = arith.constant 0.000000e+00 : f32
    %7 = vector.broadcast %cst_5 : f32 to vector<8x256xf32>
    %8 = arith.maximumf %6, %7 : vector<8x256xf32>
    %c0_6 = arith.constant 0 : index
    %c0_7 = arith.constant 0 : index
    %9 = vector.load %arg4[%c0_6, %c0_7] : memref<256x256xbf16, #tpu.memory_space<vmem>>, vector<256x256xbf16>
    %10 = arith.extf %9 : vector<256x256xbf16> to vector<256x256xf32>
    %cst_8 = arith.constant dense<0.000000e+00> : vector<8x256xf32>
    %11 = tpu.matmul %8, %10, %cst_8 {dimension_numbers = #tpu.dot_dimension_numbers<[1], [0], [0], [1], [0, 0, 1, 1], [], []>} : vector<8x256xf32>, vector<256x256xf32>, vector<8x256xf32> -> vector<8x256xf32>
    %c0_9 = arith.constant 0 : index
    %c0_10 = arith.constant 0 : index
    %12 = vector.load %arg5[%c0_9, %c0_10] : memref<1x256xf32, #tpu.memory_space<vmem>>, vector<1x256xf32>
    %13 = vector.broadcast %12 : vector<1x256xf32> to vector<8x256xf32>
    %14 = arith.addf %11, %13 : vector<8x256xf32>
    %cst_11 = arith.constant 0.000000e+00 : f32
    %15 = vector.broadcast %cst_11 : f32 to vector<8x256xf32>
    %16 = arith.maximumf %14, %15 : vector<8x256xf32>
    %c0_12 = arith.constant 0 : index
    %c0_13 = arith.constant 0 : index
    %17 = vector.load %arg6[%c0_12, %c0_13] : memref<256x256xbf16, #tpu.memory_space<vmem>>, vector<256x256xbf16>
    %18 = arith.extf %17 : vector<256x256xbf16> to vector<256x256xf32>
    %cst_14 = arith.constant dense<0.000000e+00> : vector<8x256xf32>
    %19 = tpu.matmul %16, %18, %cst_14 {dimension_numbers = #tpu.dot_dimension_numbers<[1], [0], [0], [1], [0, 0, 1, 1], [], []>} : vector<8x256xf32>, vector<256x256xf32>, vector<8x256xf32> -> vector<8x256xf32>
    %c0_15 = arith.constant 0 : index
    %c0_16 = arith.constant 0 : index
    %20 = vector.load %arg7[%c0_15, %c0_16] : memref<1x256xf32, #tpu.memory_space<vmem>>, vector<1x256xf32>
    %21 = vector.broadcast %20 : vector<1x256xf32> to vector<8x256xf32>
    %22 = arith.addf %19, %21 : vector<8x256xf32>
    %cst_17 = arith.constant 0.000000e+00 : f32
    %23 = vector.broadcast %cst_17 : f32 to vector<8x256xf32>
    %24 = arith.maximumf %22, %23 : vector<8x256xf32>
    %c0_18 = arith.constant 0 : index
    %c0_19 = arith.constant 0 : index
    %25 = vector.load %arg8[%c0_18, %c0_19] : memref<256x5xbf16, #tpu.memory_space<vmem>>, vector<256x5xbf16>
    %26 = arith.extf %25 : vector<256x5xbf16> to vector<256x5xf32>
    %cst_20 = arith.constant dense<0.000000e+00> : vector<8x5xf32>
    %27 = tpu.matmul %24, %26, %cst_20 {dimension_numbers = #tpu.dot_dimension_numbers<[1], [0], [0], [1], [0, 0, 1, 1], [], []>} : vector<8x256xf32>, vector<256x5xf32>, vector<8x5xf32> -> vector<8x5xf32>
    %c0_21 = arith.constant 0 : index
    %c0_22 = arith.constant 0 : index
    %28 = vector.load %arg9[%c0_21, %c0_22] : memref<1x5xf32, #tpu.memory_space<vmem>>, vector<1x5xf32>
    %29 = vector.broadcast %28 : vector<1x5xf32> to vector<8x5xf32>
    %30 = arith.addf %27, %29 : vector<8x5xf32>
    %31 = vector.extract_strided_slice %30 {offsets = [0, 0], sizes = [8, 1], strides = [1, 1]} : vector<8x5xf32> to vector<8x1xf32>
    %32 = vector.extract_strided_slice %30 {offsets = [0, 1], sizes = [8, 4], strides = [1, 1]} : vector<8x5xf32> to vector<8x4xf32>
    %cst_23 = arith.constant dense<0.000000e+00> : vector<8xf32>
    %33 = vector.multi_reduction <add>, %32, %cst_23 [1] : vector<8x4xf32> to vector<8xf32>
    %34 = vector.shape_cast %33 : vector<8xf32> to vector<8x1xf32>
    %cst_24 = arith.constant 2.500000e-01 : f32
    %35 = vector.broadcast %cst_24 : f32 to vector<8x1xf32>
    %36 = arith.mulf %34, %35 : vector<8x1xf32>
    %37 = vector.broadcast %36 : vector<8x1xf32> to vector<8x4xf32>
    %38 = arith.subf %32, %37 : vector<8x4xf32>
    %39 = vector.broadcast %31 : vector<8x1xf32> to vector<8x4xf32>
    %40 = arith.addf %39, %38 : vector<8x4xf32>
    %c0_25 = arith.constant 0 : index
    %c0_26 = arith.constant 0 : index
    %41 = vector.load %arg10[%c0_25, %c0_26] : memref<8x4xf32, #tpu.memory_space<vmem>>, vector<8x4xf32>
    tpu.vector_store %arg10[%c0_25, %c0_26], %40 {strides = array<i32>} : memref<8x4xf32, #tpu.memory_space<vmem>>, vector<8x4xf32>,
    return
  }
  func.func @transform_0(%arg0: i32) -> (i32, i32) {
    %c0_i32 = arith.constant 0 : i32
    %c0_i32_0 = arith.constant 0 : i32
    return %arg0, %c0_i32 : i32, i32
  }
  func.func @transform_1(%arg0: i32) -> (i32, i32) {
    %c0_i32 = arith.constant 0 : i32
    %c0_i32_0 = arith.constant 0 : i32
    %c0_i32_1 = arith.constant 0 : i32
    return %c0_i32, %c0_i32_0 : i32, i32
  }
  func.func @transform_2(%arg0: i32) -> (i32, i32) {
    %c0_i32 = arith.constant 0 : i32
    %c0_i32_0 = arith.constant 0 : i32
    %c0_i32_1 = arith.constant 0 : i32
    return %c0_i32, %c0_i32_0 : i32, i32
  }
  func.func @transform_3(%arg0: i32) -> (i32, i32) {
    %c0_i32 = arith.constant 0 : i32
    %c0_i32_0 = arith.constant 0 : i32
    %c0_i32_1 = arith.constant 0 : i32
    return %c0_i32, %c0_i32_0 : i32, i32
  }
  func.func @transform_4(%arg0: i32) -> (i32, i32) {
    %c0_i32 = arith.constant 0 : i32
    %c0_i32_0 = arith.constant 0 : i32
    %c0_i32_1 = arith.constant 0 : i32
    return %c0_i32, %c0_i32_0 : i32, i32
  }
  func.func @transform_5(%arg0: i32) -> (i32, i32) {
    %c0_i32 = arith.constant 0 : i32
    %c0_i32_0 = arith.constant 0 : i32
    %c0_i32_1 = arith.constant 0 : i32
    return %c0_i32, %c0_i32_0 : i32, i32
  }
  func.func @transform_6(%arg0: i32) -> (i32, i32) {
    %c0_i32 = arith.constant 0 : i32
    %c0_i32_0 = arith.constant 0 : i32
    %c0_i32_1 = arith.constant 0 : i32
    return %c0_i32, %c0_i32_0 : i32, i32
  }
  func.func @transform_7(%arg0: i32) -> (i32, i32) {
    %c0_i32 = arith.constant 0 : i32
    %c0_i32_0 = arith.constant 0 : i32
    %c0_i32_1 = arith.constant 0 : i32
    return %c0_i32, %c0_i32_0 : i32, i32
  }
  func.func @transform_8(%arg0: i32) -> (i32, i32) {
    %c0_i32 = arith.constant 0 : i32
    %c0_i32_0 = arith.constant 0 : i32
    %c0_i32_1 = arith.constant 0 : i32
    return %c0_i32, %c0_i32_0 : i32, i32
  }
  func.func @transform_9(%arg0: i32) -> (i32, i32) {
    %c0_i32 = arith.constant 0 : i32
    %c0_i32_0 = arith.constant 0 : i32
    return %arg0, %c0_i32 : i32, i32
  }
}

</mosaic_0001>

<bundles_post_ra>
// kernel: tpu_custom_call.1
= control target key start
LH: loop header
LB: loop body
LE: loop exit
PB: predicated region body
PF: predicated region fallthrough
CT: control target
= control target key end

     0   :  { %14 = vsyncpa [#allocation3], 0  ;;  %s1350_s0 = inlined_call_operand.vmem [shape: f32[8,16], index: 0, kind: input, shape index: {}]   ;;  %s1351_s1 = inlined_call_operand.vmem [shape: bf16[16,256], index: 1, kind: input, shape index: {}]   ;;  %s1352_s2 = inlined_call_operand.vmem [shape: f32[1,256], index: 2, kind: input, shape index: {}]   ;;  %s1353_s3 = inlined_call_operand.hbm [shape: bf16[256,256], index: 3, kind: input, shape index: {}]   ;;  %s1354_s4 = inlined_call_operand.vmem [shape: f32[1,256], index: 4, kind: input, shape index: {}]   ;;  %s1355_s5 = inlined_call_operand.hbm [shape: bf16[256,256], index: 5, kind: input, shape index: {}]   ;;  %s1356_s6 = inlined_call_operand.vmem [shape: f32[1,256], index: 6, kind: input, shape index: {}]   ;;  %s1357_s7 = inlined_call_operand.vmem [shape: bf16[256,5], index: 7, kind: input, shape index: {}]   ;;  %s1358_s8 = inlined_call_operand.vmem [shape: f32[1,5], index: 8, kind: input, shape index: {}]   ;;  %s1359_s9 = inlined_call_operand.vmem [shape: f32[8,4], index: 9, kind: output, shape index: {}]  }
   0x1   :  { %15 = vsyncpa [#allocation5], 0  ;;  %s1187_s30 = smov [#allocation2]   ;;  %s1139_s13 = scalar_lea.hbm %s1353_s3, 4096 }
   0x2   :  { %s27_s10 = sshll.u32 %s1187_s30, 4  ;;  %p1140_p0 = scmp.ne.s32.totalorder %s1353_s3, %s1139_s13  ;;  %s28_s10 = int_to_ptr.vmem [resolvable:$true] %s27_s10 }
   0x3   :  { %p1143_p1 = scmp.lt.u32.totalorder %s1139_s13, %s1353_s3 }
   0x5   :  { %p1145_p2 = pnand %p1143_p1, %p1140_p0 }
   0x7   :  { %1148 = shalt.err (!%p1145_p2)
}
   0x8   :  { %s1149_s18 = scalar_lea.vmem %s28_s10, 4096  ;;  %p1154_p4 = scmp.lt.s32.totalorder %s28_s10, %s28_s10 }
   0x9   :  { %p1150_p3 = scmp.ne.s32.totalorder %s28_s10, %s1149_s18  ;;  %p1155_p5 = scmp.lt.s32.totalorder %s1149_s18, %s1149_s18 }
   0xb   :  { %p1156_p6 = por %p1155_p5, %p1154_p4 }
   0xd   :  { %p1157_p7 = pnand %p1156_p6, %p1150_p3 }
   0xf   :  { %1160 = shalt.err (!%p1157_p7)
}
  0x10   :  { %s1188_s19 = smov 128   ;;  %s1189_s20 = smov 8  }
  0x11   :  { %33 = dma.hbm_to_vmem [thread:$0]  %s1353_s3, 4096, %s28_s10, [#allocation3], %s1188_s19, %s1188_s19, %s1189_s20  }
  0x12   :  { %s1190_s23 = smov [#allocation4]   ;;  %s1161_s27 = scalar_lea.hbm %s1355_s5, 4096 }
  0x13   :  { %s41_s24 = sshll.u32 %s1190_s23, 4  ;;  %p1162_p8 = scmp.ne.s32.totalorder %s1355_s5, %s1161_s27  ;;  %s42_s24 = int_to_ptr.vmem [resolvable:$true] %s41_s24 }
  0x14   :  { %p1165_p9 = scmp.lt.u32.totalorder %s1161_s27, %s1355_s5 }
  0x16   :  { %p1167_p10 = pnand %p1165_p9, %p1162_p8 }
  0x18   :  { %1170 = shalt.err (!%p1167_p10)
}
  0x19   :  { %s1171_s12 = scalar_lea.vmem %s42_s24, 4096  ;;  %p1176_p12 = scmp.lt.s32.totalorder %s42_s24, %s42_s24 }
  0x1a   :  { %p1172_p11 = scmp.ne.s32.totalorder %s42_s24, %s1171_s12  ;;  %p1177_p13 = scmp.lt.s32.totalorder %s1171_s12, %s1171_s12 }
  0x1c   :  { %p1178_p0 = por %p1177_p13, %p1176_p12 }
  0x1e   :  { %p1179_p1 = pnand %p1178_p0, %p1172_p11 }
  0x20   :  { %1182 = shalt.err (!%p1179_p1)
}
  0x21   :  { %47 = dma.hbm_to_vmem [thread:$0]  %s1355_s5, 4096, %s42_s24, [#allocation5], %s1188_s19, %s1188_s19, %s1189_s20  }
  0x22   :  { %1183 = dma.done.wait [#allocation3], 4096  }
  0x23   :  { %1184 = vsyncadd [#allocation3], 4294963200 }
  0x24   :  { %1185 = dma.done.wait [#allocation5], 4096  }
  0x25   :  { %1186 = vsyncadd [#allocation5], 4294963200  ;;  %v1191_v0 = vmov 0.0   ;;  %v1040_v1 = vld [vmem:[%s1351_s1 + $0x4] ss:$8 sps:$4 sm:$0xff]   ;;  %vm79_vm0 = vcmask 130048  }
  0x26   :  { %147 = vmatprep.mubr.f32.mxu0 %v1191_v0  ;;  %v1042_v2 = vld [vmem:[%s1351_s1] ss:$8 sps:$4 sm:$0xff]   ;;  %802 = vmatprep.subr.bf16.mxu0 %v1040_v1  ;;  %v1043_v4 = vld [vmem:[#allocation2 + $0x4] ss:$8 sps:$4 sm:$0xff]   ;;  %v1046_v6 = vld [vmem:[#allocation2 + $0x14] ss:$8 sps:$4 sm:$0xff]  }
  0x27   :  { %v60_v3 = vld [vmem:[%s1350_s0] sm:$0xff]  ;;  %804 = vmatpush1.bf16.msra.mxu0 %v1042_v2  ;;  %806 = vmatprep.subr.bf16.mxu1 %v1043_v4  ;;  %v1048_v7 = vld [vmem:[#allocation2 + $0x10] ss:$8 sps:$4 sm:$0xff]   ;;  %v1052_v10 = vld [vmem:[#allocation2 + $0x34] ss:$8 sps:$4 sm:$0xff]   ;;  %v69_v2 = vlaneseq  ;;  %vm663_vm1 = vcmask 31744  }
  0x28   :  { %v1045_v5 = vld [vmem:[#allocation2] ss:$8 sps:$4 sm:$0xff]   ;;  %v1049_v8 = vld [vmem:[#allocation2 + $0x24] ss:$8 sps:$4 sm:$0xff]   ;;  %v1054_v11 = vld [vmem:[#allocation2 + $0x30] ss:$8 sps:$4 sm:$0xff]  }
  0x29   :  { %808 = vmatpush1.bf16.msra.mxu1 %v1045_v5  ;;  %v1051_v9 = vld [vmem:[#allocation2 + $0x20] ss:$8 sps:$4 sm:$0xff]   ;;  %v1055_v12 = vld [vmem:[#allocation2 + $0x44] ss:$8 sps:$4 sm:$0xff]   ;;  %v1058_v14 = vld [vmem:[#allocation2 + $0x54] ss:$8 sps:$4 sm:$0xff]  }
  0x2a   :  { %685 = vmatmul.mubr.msk.f32.vlgmr.msra.gmra.mrb[0].mxu0 %vm79_vm0, %v60_v3  ;;  %810 = vmatprep.subr.bf16.mxu1 %v1046_v6  ;;  %v1057_v13 = vld [vmem:[#allocation2 + $0x40] ss:$8 sps:$4 sm:$0xff]   ;;  %v1060_v15 = vld [vmem:[#allocation2 + $0x50] ss:$8 sps:$4 sm:$0xff]   ;;  %v1061_v16 = vld [vmem:[#allocation2 + $0x64] ss:$8 sps:$4 sm:$0xff]  }
  0x2b   :  { %v1063_v17 = vld [vmem:[#allocation2 + $0x60] ss:$8 sps:$4 sm:$0xff]   ;;  %v1064_v18 = vld [vmem:[#allocation2 + $0x74] ss:$8 sps:$4 sm:$0xff]   ;;  %v1066_v19 = vld [vmem:[#allocation2 + $0x70] ss:$8 sps:$4 sm:$0xff]  }
  0x2c   :  { %v1067_v20 = vld [vmem:[#allocation2 + $0x84] ss:$8 sps:$4 sm:$0xff]   ;;  %v1069_v21 = vld [vmem:[#allocation2 + $0x80] ss:$8 sps:$4 sm:$0xff]   ;;  %v1070_v22 = vld [vmem:[#allocation2 + $0x94] ss:$8 sps:$4 sm:$0xff]  }
  0x2d   :  { %812 = vmatpush1.bf16.msra.mxu1 %v1048_v7  ;;  %v1072_v23 = vld [vmem:[#allocation2 + $0x90] ss:$8 sps:$4 sm:$0xff]   ;;  %v1073_v24 = vld [vmem:[#allocation2 + $0xa4] ss:$8 sps:$4 sm:$0xff]   ;;  %v1075_v25 = vld [vmem:[#allocation2 + $0xa0] ss:$8 sps:$4 sm:$0xff]  }
  0x2e   :  { %814 = vmatprep.subr.bf16.mxu1 %v1049_v8  ;;  %v1076_v26 = vld [vmem:[#allocation2 + $0xb4] ss:$8 sps:$4 sm:$0xff]   ;;  %v1078_v27 = vld [vmem:[#allocation2 + $0xb0] ss:$8 sps:$4 sm:$0xff]   ;;  %v1079_v28 = vld [vmem:[#allocation2 + $0xc4] ss:$8 sps:$4 sm:$0xff]  }
  0x2f   :  { %v1081_v29 = vld [vmem:[#allocation2 + $0xc0] ss:$8 sps:$4 sm:$0xff]   ;;  %v1082_v30 = vld [vmem:[#allocation2 + $0xd4] ss:$8 sps:$4 sm:$0xff]   ;;  %v1084_v31 = vld [vmem:[#allocation2 + $0xd0] ss:$8 sps:$4 sm:$0xff]  }
  0x30   :  { %v1085_v32 = vld [vmem:[#allocation2 + $0xe4] ss:$8 sps:$4 sm:$0xff]   ;;  %v1087_v33 = vld [vmem:[#allocation2 + $0xe0] ss:$8 sps:$4 sm:$0xff]   ;;  %v1088_v34 = vld [vmem:[#allocation2 + $0xf4] ss:$8 sps:$4 sm:$0xff]  }
  0x31   :  { %816 = vmatpush1.bf16.msra.mxu1 %v1051_v9  ;;  %v1090_v35 = vld [vmem:[#allocation2 + $0xf0] ss:$8 sps:$4 sm:$0xff]   ;;  %v1091_v36 = vld [vmem:[#allocation4 + $0x4] ss:$8 sps:$4 sm:$0xff]   ;;  %v1093_v37 = vld [vmem:[#allocation4] ss:$8 sps:$4 sm:$0xff]  }
  0x32   :  { %818 = vmatprep.subr.bf16.mxu1 %v1052_v10  ;;  %v1094_v38 = vld [vmem:[#allocation4 + $0x14] ss:$8 sps:$4 sm:$0xff]   ;;  %870 = vmatprep.subr.bf16.mxu0 %v1091_v36  ;;  %v1096_v39 = vld [vmem:[#allocation4 + $0x10] ss:$8 sps:$4 sm:$0xff]   ;;  %v1097_v40 = vld [vmem:[#allocation4 + $0x24] ss:$8 sps:$4 sm:$0xff]  }
  0x33   :  { %872 = vmatpush1.bf16.msra.mxu0 %v1093_v37  ;;  %v1099_v41 = vld [vmem:[#allocation4 + $0x20] ss:$8 sps:$4 sm:$0xff]   ;;  %v1100_v42 = vld [vmem:[#allocation4 + $0x34] ss:$8 sps:$4 sm:$0xff]   ;;  %v1102_v43 = vld [vmem:[#allocation4 + $0x30] ss:$8 sps:$4 sm:$0xff]  }
  0x34   :  { %874 = vmatprep.subr.bf16.mxu0 %v1094_v38  ;;  %v1103_v44 = vld [vmem:[#allocation4 + $0x44] ss:$8 sps:$4 sm:$0xff]   ;;  %v1105_v45 = vld [vmem:[#allocation4 + $0x40] ss:$8 sps:$4 sm:$0xff]   ;;  %v1106_v46 = vld [vmem:[#allocation4 + $0x54] ss:$8 sps:$4 sm:$0xff]  }
  0x35   :  { %820 = vmatpush1.bf16.msra.mxu1 %v1054_v11  ;;  %v1108_v47 = vld [vmem:[#allocation4 + $0x50] ss:$8 sps:$4 sm:$0xff]   ;;  %v1109_v48 = vld [vmem:[#allocation4 + $0x64] ss:$8 sps:$4 sm:$0xff]   ;;  %v1111_v49 = vld [vmem:[#allocation4 + $0x60] ss:$8 sps:$4 sm:$0xff]  }
  0x36   :  { %822 = vmatprep.subr.bf16.mxu1 %v1055_v12  ;;  %v1112_v50 = vld [vmem:[#allocation4 + $0x74] ss:$8 sps:$4 sm:$0xff]   ;;  %v1114_v51 = vld [vmem:[#allocation4 + $0x70] ss:$8 sps:$4 sm:$0xff]   ;;  %v1115_v52 = vld [vmem:[#allocation4 + $0x84] ss:$8 sps:$4 sm:$0xff]  }
  0x37   :  { %876 = vmatpush1.bf16.msra.mxu0 %v1096_v39  ;;  %v1117_v53 = vld [vmem:[#allocation4 + $0x80] ss:$8 sps:$4 sm:$0xff]   ;;  %v1118_v54 = vld [vmem:[#allocation4 + $0x94] ss:$8 sps:$4 sm:$0xff]   ;;  %v1120_v55 = vld [vmem:[#allocation4 + $0x90] ss:$8 sps:$4 sm:$0xff]  }
  0x38   :  { %878 = vmatprep.subr.bf16.mxu0 %v1097_v40  ;;  %v1121_v56 = vld [vmem:[#allocation4 + $0xa4] ss:$8 sps:$4 sm:$0xff]   ;;  %v1123_v57 = vld [vmem:[#allocation4 + $0xa0] ss:$8 sps:$4 sm:$0xff]   ;;  %v1124_v58 = vld [vmem:[#allocation4 + $0xb4] ss:$8 sps:$4 sm:$0xff]  }
  0x39   :  { %824 = vmatpush1.bf16.msra.mxu1 %v1057_v13  ;;  %v1126_v59 = vld [vmem:[#allocation4 + $0xb0] ss:$8 sps:$4 sm:$0xff]   ;;  %v1127_v60 = vld [vmem:[#allocation4 + $0xc4] ss:$8 sps:$4 sm:$0xff]   ;;  %v1129_v61 = vld [vmem:[#allocation4 + $0xc0] ss:$8 sps:$4 sm:$0xff]  }
  0x3a   :  { %826 = vmatprep.subr.bf16.mxu1 %v1058_v14  ;;  %v1130_v62 = vld [vmem:[#allocation4 + $0xd4] ss:$8 sps:$4 sm:$0xff]   ;;  %v1132_v63 = vld [vmem:[#allocation4 + $0xd0] ss:$8 sps:$4 sm:$0xff]   ;;  %v1133_v0 = vld [vmem:[#allocation4 + $0xe4] ss:$8 sps:$4 sm:$0xff]  }
  0x3b   :  { %880 = vmatpush1.bf16.msra.mxu0 %v1099_v41  ;;  %v1135_v1 = vld [vmem:[#allocation4 + $0xe0] ss:$8 sps:$4 sm:$0xff]   ;;  %v70_v3 = vshrl.u32 %v69_v2, 7  ;;  %v756_v39 = vld [vmem:[%s1357_s7 + $0x30] sm:$0xff]   ;;  %v765_v40 = vld [vmem:[%s1357_s7 + $0x78] sm:$0xff]  }
  0x3c   :  { %882 = vmatprep.subr.bf16.mxu0 %v1100_v42  ;;  %v67_v5 = vld [vmem:[%s1352_s2] sm:$0x3]  ;;  %v757_v41 = vld [vmem:[%s1357_s7 + $0x38] sm:$0xff]  }
  0x3d   :  { %828 = vmatpush1.bf16.msra.mxu1 %v1060_v15  ;;  %v1277_v4 = vsub.s32 0, %v70_v3  ;;  %v1282_v6 = vsub.s32 1, %v70_v3  ;;  %v1136_v15 = vld [vmem:[#allocation4 + $0xf4] ss:$8 sps:$4 sm:$0xff]   ;;  %v433_v42 = vld [vmem:[%s1356_s6] sm:$0x3] }
  0x3e   :  { %830 = vmatprep.subr.bf16.mxu1 %v1061_v16  ;;  %v1138_v16 = vld [vmem:[#allocation4 + $0xf0] ss:$8 sps:$4 sm:$0xff]   ;;  %s1193_s6 = smov 127  }
  0x3f   :  { %884 = vmatpush1.bf16.msra.mxu0 %v1102_v43  ;;  %v72_v7 = vrot.slane %v67_v5, %v1277_v4  ;;  %v76_v8 = vrot.slane %v67_v5, %v1282_v6  ;;  %v438_v43 = vrot.slane %v433_v42, %v1277_v4 }
  0x40   :  { %886 = vmatprep.subr.bf16.mxu0 %v1103_v44  ;;  %v442_v44 = vrot.slane %v433_v42, %v1282_v6 }
  0x41   :  { %832 = vmatpush1.bf16.msra.mxu1 %v1063_v17  ;;  %v758_v17 = vld [vmem:[%s1357_s7 + $0x40] sm:$0xff]  }
  0x42   :  { %834 = vmatprep.subr.bf16.mxu1 %v1064_v18  ;;  %v688_v18 = vld [vmem:[%s1357_s7] sm:$0xff]  }
  0x43   :  { %888 = vmatpush1.bf16.msra.mxu0 %v1105_v45 }
  0x44   :  { %890 = vmatprep.subr.bf16.mxu0 %v1106_v46 }
  0x45   :  { %836 = vmatpush1.bf16.msra.mxu1 %v1066_v19  ;;  %v759_v19 = vld [vmem:[%s1357_s7 + $0x48] sm:$0xff]  }
  0x46   :  { %838 = vmatprep.subr.bf16.mxu1 %v1067_v20  ;;  %v751_v20 = vld [vmem:[%s1357_s7 + $0x8] sm:$0xff]  }
  0x47   :  { %892 = vmatpush1.bf16.msra.mxu0 %v1108_v47 }
  0x48   :  { %894 = vmatprep.subr.bf16.mxu0 %v1109_v48 }
  0x49   :  { %840 = vmatpush1.bf16.msra.mxu1 %v1069_v21  ;;  %v760_v21 = vld [vmem:[%s1357_s7 + $0x50] sm:$0xff]  }
  0x4a   :  { %842 = vmatprep.subr.bf16.mxu1 %v1070_v22  ;;  %v752_v22 = vld [vmem:[%s1357_s7 + $0x10] sm:$0xff]  }
  0x4b   :  { %896 = vmatpush1.bf16.msra.mxu0 %v1111_v49 }
  0x4c   :  { %898 = vmatprep.subr.bf16.mxu0 %v1112_v50 }
  0x4d   :  { %844 = vmatpush1.bf16.msra.mxu1 %v1072_v23  ;;  %v761_v23 = vld [vmem:[%s1357_s7 + $0x58] sm:$0xff]  }
  0x4e   :  { %846 = vmatprep.subr.bf16.mxu1 %v1073_v24  ;;  %v753_v24 = vld [vmem:[%s1357_s7 + $0x18] sm:$0xff]  }
  0x4f   :  { %900 = vmatpush1.bf16.msra.mxu0 %v1114_v51  ;;  %v1192_v51 = vmov 0  }
  0x50   :  { %902 = vmatprep.subr.bf16.mxu0 %v1115_v52  ;;  %1038 = vset.pattern.permute.xlu1 %v1192_v51 }
  0x51   :  { %848 = vmatpush1.bf16.msra.mxu1 %v1075_v25  ;;  %v762_v25 = vld [vmem:[%s1357_s7 + $0x60] sm:$0xff]   ;;  %1039 = vset.pattern.permute.xlu0 %v1192_v51 }
  0x52   :  { %850 = vmatprep.subr.bf16.mxu1 %v1076_v26  ;;  %v754_v26 = vld [vmem:[%s1357_s7 + $0x20] sm:$0xff]  }
  0x53   :  { %904 = vmatpush1.bf16.msra.mxu0 %v1117_v53  ;;  %v686_v53 = vld [vmem:[%s1358_s8] ss:$0 sm:$0xff] }
  0x54   :  { %906 = vmatprep.subr.bf16.mxu0 %v1118_v54 }
  0x55   :  { %852 = vmatpush1.bf16.msra.mxu1 %v1078_v27  ;;  %v763_v27 = vld [vmem:[%s1357_s7 + $0x68] sm:$0xff]  }
  0x56   :  { %854 = vmatprep.subr.bf16.mxu1 %v1079_v28  ;;  %v755_v28 = vld [vmem:[%s1357_s7 + $0x28] sm:$0xff]  }
  0x57   :  { %908 = vmatpush1.bf16.msra.mxu0 %v1120_v55 }
  0x58   :  { %910 = vmatprep.subr.bf16.mxu0 %v1121_v56 }
  0x59   :  { %856 = vmatpush1.bf16.msra.mxu1 %v1081_v29  ;;  %v764_v29 = vld [vmem:[%s1357_s7 + $0x70] sm:$0xff]  }
  0x5a   :  { %858 = vmatprep.subr.bf16.mxu1 %v1082_v30  ;;  %v252_v30 = vld [vmem:[%s1354_s4] sm:$0x3] }
  0x5b   :  { %912 = vmatpush1.bf16.msra.mxu0 %v1123_v57 }
  0x5c   :  { %914 = vmatprep.subr.bf16.mxu0 %v1124_v58 }
  0x5d   :  { %860 = vmatpush1.bf16.msra.mxu1 %v1084_v31  ;;  %v257_v31 = vrot.slane %v252_v30, %v1277_v4 }
  0x5e   :  { %862 = vmatprep.subr.bf16.mxu1 %v1085_v32  ;;  %v261_v32 = vrot.slane %v252_v30, %v1282_v6 }
  0x5f   :  { %916 = vmatpush1.bf16.msra.mxu0 %v1126_v59 }
  0x60   :  { %918 = vmatprep.subr.bf16.mxu0 %v1127_v60 }
  0x61   :  { %864 = vmatpush1.bf16.msra.mxu1 %v1087_v33 }
  0x62   :  { %866 = vmatprep.subr.bf16.mxu1 %v1088_v34 }
  0x63   :  { %920 = vmatpush1.bf16.msra.mxu0 %v1129_v61 }
  0x64   :  { %922 = vmatprep.subr.bf16.mxu0 %v1130_v62 }
  0x65   :  { %868 = vmatpush1.bf16.msra.mxu1 %v1090_v35 }
  0x66   :  { %934 = vmatprep.subr.bf16.mxu1 %v758_v17 }
  0x67   :  { %924 = vmatpush1.bf16.msra.mxu0 %v1132_v63 }
  0x68   :  { %926 = vmatprep.subr.bf16.mxu0 %v1133_v0 }
  0x6b   :  { %928 = vmatpush1.bf16.msra.mxu0 %v1135_v1 }
  0x6c   :  { %930 = vmatprep.subr.bf16.mxu0 %v1136_v15 }
  0x6f   :  { %932 = vmatpush1.bf16.msra.mxu0 %v1138_v16 }
  0xfd   :  { %v149_v9 = vpop.f32.mrb[0].mxu0 }
  0xfe   :  { %v150_v10 = vadd.f32 %v149_v9, %v72_v7  ;;  %v151_v11 = vpop.f32.mrb[1].mxu0 }
  0xff   :  { %v152_v12 = vadd.f32 %v151_v11, %v76_v8 }
 0x100   :  { %v154_v14 = vmax.f32 %v150_v10, 0.0 }
 0x101   :  { %v155_v13 = vmax.f32 %v152_v12, 0.0 }
 0x103   :  { %328 = vmatprep.mubr.f32.mxu1 %v155_v13 }
 0x104   :  { %329 = vmatmul.mubr.f32.vlgmr.msra.gmra.mrb[0].mxu1 %v154_v14 }
 0x105   :  { %936 = vmatpush3.bf16.msra.mxu1 %v688_v18 }
 0x106   :  { %938 = vmatprep.subr.bf16.mxu1 %v759_v19 }
 0x109   :  { %940 = vmatpush3.bf16.msra.mxu1 %v751_v20 }
 0x10a   :  { %942 = vmatprep.subr.bf16.mxu1 %v760_v21 }
 0x10d   :  { %944 = vmatpush3.bf16.msra.mxu1 %v752_v22 }
 0x10e   :  { %946 = vmatprep.subr.bf16.mxu1 %v761_v23 }
 0x111   :  { %948 = vmatpush3.bf16.msra.mxu1 %v753_v24 }
 0x112   :  { %950 = vmatprep.subr.bf16.mxu1 %v762_v25 }
 0x115   :  { %952 = vmatpush3.bf16.msra.mxu1 %v754_v26 }
 0x116   :  { %954 = vmatprep.subr.bf16.mxu1 %v763_v27 }
 0x119   :  { %956 = vmatpush3.bf16.msra.mxu1 %v755_v28 }
 0x11a   :  { %958 = vmatprep.subr.bf16.mxu1 %v764_v29 }
 0x11d   :  { %960 = vmatpush3.bf16.msra.mxu1 %v756_v39 }
 0x11e   :  { %962 = vmatprep.subr.bf16.mxu1 %v765_v40 }
 0x121   :  { %964 = vmatpush3.bf16.msra.mxu1 %v757_v41 }
 0x1d7   :  { %v330_v33 = vpop.f32.mrb[0].mxu1 }
 0x1d8   :  { %v331_v34 = vadd.f32 %v330_v33, %v257_v31  ;;  %v332_v35 = vpop.f32.mrb[1].mxu1 }
 0x1d9   :  { %v333_v36 = vadd.f32 %v332_v35, %v261_v32 }
 0x1da   :  { %v335_v38 = vmax.f32 %v331_v34, 0.0 }
 0x1db   :  { %v336_v37 = vmax.f32 %v333_v36, 0.0 }
 0x1dd   :  { %509 = vmatprep.mubr.f32.mxu0 %v336_v37 }
 0x1de   :  { %510 = vmatmul.mubr.f32.vlgmr.msra.gmra.mrb[2].mxu0 %v335_v38 }
 0x2b1   :  { %v511_v45 = vpop.f32.mrb[2].mxu0 }
 0x2b2   :  { %v512_v46 = vadd.f32 %v511_v45, %v438_v43  ;;  %v513_v47 = vpop.f32.mrb[3].mxu0 }
 0x2b3   :  { %v514_v48 = vadd.f32 %v513_v47, %v442_v44 }
 0x2b4   :  { %v516_v50 = vmax.f32 %v512_v46, 0.0 }
 0x2b5   :  { %v517_v49 = vmax.f32 %v514_v48, 0.0 }
 0x2b7   :  { %653 = vmatprep.mubr.f32.mxu1 %v517_v49 }
 0x2b8   :  { %654 = vmatmul.mubr.f32.vlgmr.msra.gmra.mrb[2].mxu1 %v516_v50 }
 0x38b   :  { %v798_v52 = vpop.f32.mrb[2].mxu1 }
 0x38c   :  { %v799_v54 = vpop.f32.mrb[3].mxu1 }
 0x38d   :  { %v800_v55 = vadd.f32 %v799_v54, %v798_v52 }
 0x38f   :  { %v656_v56 = vadd.f32 %v800_v55, %v686_v53 }
 0x391   :  { %670 = vperm.xlu1 %1038, %v656_v56   ;;  %660 = vrot.lane.b32.xlu0 %v656_v56, %s1193_s6 }
 0x403   :  { %v661_v57 = vpop.permute.xlu0 %660 }
 0x404   :  { %v664_v58 = vsel %vm663_vm1, %v661_v57, 0.0 }
 0x405   :  { %665 = vadd.xlane.f32.xlu0 %v664_v58 }
 0x410   :  { %v671_v62 = vpop.permute.xlu1 %670 }
 0x492   :  { %v666_v59 = vpop.xlane.xlu0 %665 }
 0x493   :  { %v667_v60 = vmul.f32 0.25, %v666_v59 }
 0x495   :  { %v668_v61 = vsub.f32 %v656_v56, %v667_v60 }
 0x497   :  { %v673_v63 = vadd.f32 %v671_v62, %v668_v61 }
 0x499   :  { %675 = vrot.lane.b32.xlu1 %v673_v63, %s1193_s6 }
 0x50b   :  { %v676_v0 = vpop.permute.xlu1 %675 }
 0x50c   :  { %678 = vst.msk [vmem:[%s1359_s9] sm:$0xff] %vm663_vm1, %v676_v0 }
 0x50d   :  { %683 = vsyncpa [#allocation3], 1 }
 0x50e   :  { %684 = vsyncpa [#allocation5], 1 }

</bundles_post_ra>
